<compile_context>
chip_gen: v5e
topology: v5e:2x2
jax: 0.10.0
libtpu: 0.0.40
codegen_flags: <defaults>
</compile_context>

<pallas_src>
import functools

import jax
import jax.numpy as jnp
from jax.experimental import pallas as pl
from jax.experimental.pallas import tpu as pltpu

LANES = 128
SUBLANES = 8
MAX_TILE_ROWS = 2048  # (2048, 128) f32 = 1 MiB per input per buffer
N_CORES = 2           # leading "parallel" axis (megacore on v7x; serial elsewhere)


def _mse_mae_kernel(yp_ref, yt_ref, sse_ref, sae_ref, *,
                    rows, tile_rows, steps_per_core, needs_mask):
    c = pl.program_id(0)  # core / parallel axis
    i = pl.program_id(1)  # reduction axis (arbitrary)

    @pl.when(i == 0)
    def _():
        sse_ref[...] = jnp.zeros_like(sse_ref)
        sae_ref[...] = jnp.zeros_like(sae_ref)

    d = yp_ref[...].astype(jnp.float32) - yt_ref[...].astype(jnp.float32)

    if needs_mask:
        # Zero out rows beyond the logical row count (ragged last block and
        # clamped duplicate blocks contribute nothing).
        start = (c * steps_per_core + i) * tile_rows
        row_id = start + jax.lax.broadcasted_iota(jnp.int32, d.shape, 0)
        d = jnp.where(row_id < rows, d, jnp.float32(0.0))

    # Keep the hot loop on the VPU: fold (tile_rows, 128) -> (tile_rows//8, 8, 128)
    # and accumulate into the resident (8, 128) output block. The cross-lane
    # reduction is deferred to the wrapper (done once, on a tiny array).
    sq = (d * d).reshape(-1, SUBLANES, LANES)
    ab = jnp.abs(d).reshape(-1, SUBLANES, LANES)
    sse_ref[...] += jnp.sum(sq, axis=0)
    sae_ref[...] += jnp.sum(ab, axis=0)


def _reduce_sums(yp2d, yt2d):
    """Returns per-core partial-sum slabs of shape (N_CORES*8, 128), f32."""
    rows = yp2d.shape[0]                      # multiple of 8 (wrapper guarantees)
    tile_rows = min(MAX_TILE_ROWS, rows)      # multiple of 8
    num_blocks = -(-rows // tile_rows)
    steps_per_core = -(-num_blocks // N_CORES)
    needs_mask = (rows % tile_rows != 0) or (num_blocks != N_CORES * steps_per_core)

    def in_index_map(c, i):
        blk = c * steps_per_core + i
        # Clamp so the DMA never targets a fully out-of-bounds block; the
        # in-kernel mask zeroes any duplicated / overhanging rows.
        return (jnp.minimum(blk, num_blocks - 1), 0)

    kernel = functools.partial(
        _mse_mae_kernel,
        rows=rows,
        tile_rows=tile_rows,
        steps_per_core=steps_per_core,
        needs_mask=needs_mask,
    )

    out_rows = N_CORES * SUBLANES
    sse, sae = pl.pallas_call(
        kernel,
        out_shape=(
            jax.ShapeDtypeStruct((out_rows, LANES), jnp.float32),
            jax.ShapeDtypeStruct((out_rows, LANES), jnp.float32),
        ),
        grid_spec=pltpu.PrefetchScalarGridSpec(
            num_scalar_prefetch=0,
            grid=(N_CORES, steps_per_core),
            in_specs=[
                pl.BlockSpec((tile_rows, LANES), in_index_map),
                pl.BlockSpec((tile_rows, LANES), in_index_map),
            ],
            out_specs=[
                pl.BlockSpec((SUBLANES, LANES), lambda c, i: (c, 0)),
                pl.BlockSpec((SUBLANES, LANES), lambda c, i: (c, 0)),
            ],
        ),
        compiler_params=pltpu.CompilerParams(
            dimension_semantics=("parallel", "arbitrary"),
            vmem_limit_bytes=32 * 1024 * 1024,
        ),
    )(yp2d, yt2d)
    return sse, sae


def mse_plus_mae(y_pred, y_true):
    """Equivalent of MsePlusMae.forward: mean((p-t)^2) + mean(|p-t|)."""
    assert y_pred.shape == y_true.shape
    n = y_pred.size

    # Flatten (cheap reshape); keep the native dtype — the kernel upcasts on the VPU.
    flat_p = jnp.ravel(y_pred)
    flat_t = jnp.ravel(y_true)

    chunk = SUBLANES * LANES  # 1024
    n_pad = ((n + chunk - 1) // chunk) * chunk
    if n_pad != n:
        # Small tail pad (< 1024 elements); identical zeros on both sides
        # contribute 0 to both sums, and we divide by the true n below.
        flat_p = jnp.pad(flat_p, (0, n_pad - n))
        flat_t = jnp.pad(flat_t, (0, n_pad - n))

    rows = n_pad // LANES  # multiple of 8
    yp2d = flat_p.reshape(rows, LANES)
    yt2d = flat_t.reshape(rows, LANES)

    sse_slab, sae_slab = _reduce_sums(yp2d, yt2d)
    sse = jnp.sum(sse_slab)
    sae = jnp.sum(sae_slab)

    inv_n = jnp.float32(1.0) / jnp.float32(n)
    mse = sse * inv_n
    mae = sae * inv_n
    # TODO(synk): the PyTorch forward prints mse/mae via Python print; we only return the value.
    return mse + mae


if __name__ == "__main__":
    key = jax.random.PRNGKey(0)
    k1, k2 = jax.random.split(key)
    shape = (2, 4, 16, 16)  # small NCHW-like regression tensor
    y_pred = jax.random.normal(k1, shape, dtype=jnp.float32)
    y_true = jax.random.normal(k2, shape, dtype=jnp.float32)

    out = mse_plus_mae(y_pred, y_true)
    out = jax.block_until_ready(out)

    # Reference check in plain JAX
    ref = jnp.mean((y_pred - y_true) ** 2) + jnp.mean(jnp.abs(y_pred - y_true))
    assert jnp.allclose(out, ref, rtol=1e-5, atol=1e-5), (out, ref)

    print("KERNEL_OK")
</pallas_src>

<mosaic_0001>
module attributes {stable_mosaic.version = 11 : i64} {
  func.func @_mse_mae_kernel(%arg0: i32, %arg1: i32, %arg2: memref<16x128xf32, #tpu.memory_space<vmem>>, %arg3: memref<16x128xf32, #tpu.memory_space<vmem>>, %arg4: memref<8x128xf32, #tpu.memory_space<vmem>>, %arg5: memref<8x128xf32, #tpu.memory_space<vmem>>) attributes {dimension_semantics = [#tpu.dimension_semantics<parallel>, #tpu.dimension_semantics<arbitrary>], iteration_bounds = array<i64: 2, 1>, scalar_prefetch = 0 : i64, scratch_operands = 0 : i64, tpu.core_type = #tpu.core_type<tc>, window_params = [{transform_indices = @transform_0, window_bounds = array<i64: 16, 128>}, {transform_indices = @transform_1, window_bounds = array<i64: 16, 128>}, {transform_indices = @transform_2, window_bounds = array<i64: 8, 128>}, {transform_indices = @transform_3, window_bounds = array<i64: 8, 128>}]} {
    %c0_i32 = arith.constant 0 : i32
    %0 = arith.cmpi eq, %arg1, %c0_i32 : i32
    %1 = arith.extui %0 : i1 to i32
    %c0_i32_0 = arith.constant 0 : i32
    %2 = arith.cmpi ne, %1, %c0_i32_0 : i32
    scf.if %2 {
      %cst_15 = arith.constant 0.000000e+00 : f32
      %28 = vector.broadcast %cst_15 : f32 to vector<8x128xf32>
      %c0_16 = arith.constant 0 : index
      %c0_17 = arith.constant 0 : index
      %29 = vector.load %arg4[%c0_16, %c0_17] : memref<8x128xf32, #tpu.memory_space<vmem>>, vector<8x128xf32>
      tpu.vector_store %arg4[%c0_16, %c0_17], %28 {strides = array<i32>} : memref<8x128xf32, #tpu.memory_space<vmem>>, vector<8x128xf32>,
      %cst_18 = arith.constant 0.000000e+00 : f32
      %30 = vector.broadcast %cst_18 : f32 to vector<8x128xf32>
      %c0_19 = arith.constant 0 : index
      %c0_20 = arith.constant 0 : index
      %31 = vector.load %arg5[%c0_19, %c0_20] : memref<8x128xf32, #tpu.memory_space<vmem>>, vector<8x128xf32>
      tpu.vector_store %arg5[%c0_19, %c0_20], %30 {strides = array<i32>} : memref<8x128xf32, #tpu.memory_space<vmem>>, vector<8x128xf32>,
    } else {
    }
    %c0 = arith.constant 0 : index
    %c0_1 = arith.constant 0 : index
    %3 = vector.load %arg2[%c0, %c0_1] : memref<16x128xf32, #tpu.memory_space<vmem>>, vector<16x128xf32>
    %c0_2 = arith.constant 0 : index
    %c0_3 = arith.constant 0 : index
    %4 = vector.load %arg3[%c0_2, %c0_3] : memref<16x128xf32, #tpu.memory_space<vmem>>, vector<16x128xf32>
    %5 = arith.subf %3, %4 : vector<16x128xf32>
    %c1_i32 = arith.constant 1 : i32
    %6 = arith.muli %arg0, %c1_i32 : i32
    %7 = arith.addi %6, %arg1 : i32
    %c16_i32 = arith.constant 16 : i32
    %8 = arith.muli %7, %c16_i32 : i32
    %9 = tpu.iota {dimensions = array<i32: 0>} : vector<16x128xi32>
    %10 = vector.broadcast %8 : i32 to vector<16x128xi32>
    %11 = arith.addi %10, %9 : vector<16x128xi32>
    %c16_i32_4 = arith.constant 16 : i32
    %12 = vector.broadcast %c16_i32_4 : i32 to vector<16x128xi32>
    %13 = arith.cmpi slt, %11, %12 : vector<16x128xi32>
    %cst = arith.constant 0.000000e+00 : f32
    %14 = vector.broadcast %cst : f32 to vector<16x128xf32>
    %15 = arith.select %13, %5, %14 : vector<16x128xi1>, vector<16x128xf32>
    %16 = arith.mulf %15, %15 : vector<16x128xf32>
    %17 = vector.shape_cast %16 : vector<16x128xf32> to vector<2x8x128xf32>
    %18 = math.absf %15 : vector<16x128xf32>
    %19 = vector.shape_cast %18 : vector<16x128xf32> to vector<2x8x128xf32>
    %c0_5 = arith.constant 0 : index
    %c0_6 = arith.constant 0 : index
    %20 = vector.load %arg4[%c0_5, %c0_6] : memref<8x128xf32, #tpu.memory_space<vmem>>, vector<8x128xf32>
    %cst_7 = arith.constant dense<0.000000e+00> : vector<8x128xf32>
    %21 = vector.multi_reduction <add>, %17, %cst_7 [0] : vector<2x8x128xf32> to vector<8x128xf32>
    %22 = arith.addf %20, %21 : vector<8x128xf32>
    %c0_8 = arith.constant 0 : index
    %c0_9 = arith.constant 0 : index
    %23 = vector.load %arg4[%c0_8, %c0_9] : memref<8x128xf32, #tpu.memory_space<vmem>>, vector<8x128xf32>
    tpu.vector_store %arg4[%c0_8, %c0_9], %22 {strides = array<i32>} : memref<8x128xf32, #tpu.memory_space<vmem>>, vector<8x128xf32>,
    %c0_10 = arith.constant 0 : index
    %c0_11 = arith.constant 0 : index
    %24 = vector.load %arg5[%c0_10, %c0_11] : memref<8x128xf32, #tpu.memory_space<vmem>>, vector<8x128xf32>
    %cst_12 = arith.constant dense<0.000000e+00> : vector<8x128xf32>
    %25 = vector.multi_reduction <add>, %19, %cst_12 [0] : vector<2x8x128xf32> to vector<8x128xf32>
    %26 = arith.addf %24, %25 : vector<8x128xf32>
    %c0_13 = arith.constant 0 : index
    %c0_14 = arith.constant 0 : index
    %27 = vector.load %arg5[%c0_13, %c0_14] : memref<8x128xf32, #tpu.memory_space<vmem>>, vector<8x128xf32>
    tpu.vector_store %arg5[%c0_13, %c0_14], %26 {strides = array<i32>} : memref<8x128xf32, #tpu.memory_space<vmem>>, vector<8x128xf32>,
    return
  }
  func.func @transform_0(%arg0: i32, %arg1: i32) -> (i32, i32) {
    %c1_i32 = arith.constant 1 : i32
    %0 = arith.muli %arg0, %c1_i32 : i32
    %1 = arith.addi %0, %arg1 : i32
    %c0_i32 = arith.constant 0 : i32
    %2 = arith.minsi %1, %c0_i32 : i32
    %c0_i32_0 = arith.constant 0 : i32
    %c0_i32_1 = arith.constant 0 : i32
    return %2, %c0_i32_0 : i32, i32
  }
  func.func @transform_1(%arg0: i32, %arg1: i32) -> (i32, i32) {
    %c1_i32 = arith.constant 1 : i32
    %0 = arith.muli %arg0, %c1_i32 : i32
    %1 = arith.addi %0, %arg1 : i32
    %c0_i32 = arith.constant 0 : i32
    %2 = arith.minsi %1, %c0_i32 : i32
    %c0_i32_0 = arith.constant 0 : i32
    %c0_i32_1 = arith.constant 0 : i32
    return %2, %c0_i32_0 : i32, i32
  }
  func.func @transform_2(%arg0: i32, %arg1: i32) -> (i32, i32) {
    %c0_i32 = arith.constant 0 : i32
    %c0_i32_0 = arith.constant 0 : i32
    return %arg0, %c0_i32 : i32, i32
  }
  func.func @transform_3(%arg0: i32, %arg1: i32) -> (i32, i32) {
    %c0_i32 = arith.constant 0 : i32
    %c0_i32_0 = arith.constant 0 : i32
    return %arg0, %c0_i32 : i32, i32
  }
}

</mosaic_0001>

<bundles_post_ra>
// kernel: tpu_custom_call.1
= control target key start
LH: loop header
LB: loop body
LE: loop exit
PB: predicated region body
PF: predicated region fallthrough
CT: control target
= control target key end

     0   :  { %9 = vsyncpa [#allocation3], 0  ;;  %s1029_s0 = inlined_call_operand.hbm [shape: f32[16,128], index: 0, kind: input, shape index: {}]   ;;  %s1030_s1 = inlined_call_operand.hbm [shape: f32[16,128], index: 1, kind: input, shape index: {}]   ;;  %s1031_s2 = inlined_call_operand.hbm [shape: f32[16,128], index: 2, kind: output, shape index: {0}]   ;;  %s1032_s3 = inlined_call_operand.hbm [shape: f32[16,128], index: 3, kind: output, shape index: {1}]  }
   0x1   :  { %11 = vsyncpa [#allocation3 + $0x1], 0 }
   0x2   :  { %12 = vsyncpa [#allocation6], 0 }
   0x3   :  { %14 = vsyncpa [#allocation6 + $0x1], 0 }
   0x4   :  { %15 = vsyncpa [#allocation4], 0 }
   0x5   :  { %17 = vsyncpa [#allocation4 + $0x1], 0 }
   0x6   :  { %18 = vsyncpa [#allocation9], 0 }
   0x7   :  { %20 = vsyncpa [#allocation9 + $0x1], 0  ;;  %s835_s12 = smov 0   ;;  %s837_s13 = smov 0  }
   0x8   :  { %s839_s14 = smov 0   ;;  %s841_s15 = smov 0  }
   0x9   :  { %s843_s16 = smov 0   ;;  %s845_s17 = smov 0  }
   0xa   :  { %s847_s18 = smov 0   ;;  %s849_s19 = smov 0  }
   0xb LB: > { %s487_s20 = sadd.s32 4294967295, %s809_s19   ;;  %s488_s21 = sadd.s32 4294967294, %s809_s19   ;;  %s809_s19 = sphi %s849_s19, %s26_s19   ;;  %s805_s18 = sphi %s847_s18, %s1044_s18   ;;  %s801_s17 = sphi %s845_s17, %s1043_s17   ;;  %s797_s16 = sphi %s843_s16, %s1019_s16   ;;  %s793_s15 = sphi %s841_s15, %s1042_s15   ;;  %s789_s14 = sphi %s839_s14, %s1041_s14   ;;  %s785_s13 = sphi %s837_s13, %s1040_s13   ;;  %s781_s12 = sphi %s835_s12, %s1039_s12  }
   0xc   : > { %s38_s22 = sadd.s32 1, %s805_s18  ;;  %p778_p1 = scmp.ne.s32.totalorder %s797_s16, 0 }
   0xd   : > { %p40_p0 = scmp.ge.s32.totalorder %s38_s22, 2  ;;  %p59_p2 = scmp.eq.s32.totalorder %s809_s19, 0 }
   0xe   : > { %p64_p3 = scmp.ne.s32.totalorder %s797_s16, %s793_s15  ;;  %p65_p5 = scmp.eq.s32.totalorder %s487_s20, 0 }
   0xf   : > { %s1046_s22 = smov (%p40_p0, %s38_s22), 0  ;;  %p881_p4 = por %p778_p1, %p59_p2 }
  0x10   : > { %p885_p6 = por %p65_p5, %p64_p3  ;;  %s106_s25 = ssub.s32 %s805_s18, %s1046_s22 }
  0x11   : > { %p107_p7 = scmp.eq.s32.totalorder %s106_s25, 0  ;;  %s109_s26 = sadd.s32 1, %s789_s14 }
  0x12   : > { %p119_p8 = scmp.ne.s32.totalorder %s789_s14, %s785_s13  ;;  %p120_p9 = scmp.eq.s32.totalorder %s487_s20, 1 }
  0x13   : > { %s893_s27 = scalar_select %p107_p7, %s789_s14, %s109_s26  }
  0x14   : > { %p125_p10 = scmp.ne.s32.totalorder %s785_s13, %s781_s12  ;;  %p126_p11 = scmp.eq.s32.totalorder %s488_s21, 1 }
  0x15   : > { %p899_p12 = por %p120_p9, %p119_p8  ;;  %p490_p13 = scmp.ge.s32.totalorder %s809_s19, 2 }
  0x16   : > { %p904_p0 = por %p126_p11, %p125_p10  ;;  %p533_p1 = scmp.lt.s32.totalorder %s809_s19, 2 }
  0x17   : > { %s185_s5 = sshll.u32 %s1029_s0, 4  ;;  %s811_s6 = smov [#allocation2]   ;;  %s186_s5 = int_to_ptr.hbm [resolvable:$true] %s185_s5 }
  0x18   : > { %s187_s7 = sshll.u32 %s811_s6, 4  ;;  %p914_p2 = pnand %p533_p1, %p881_p4  ;;  %s188_s7 = int_to_ptr.vmem [resolvable:$true] %s187_s7 }
  0x19   : > { %p497_p3 = scmp.ge.s32.totalorder %s809_s19, 1  ;;  %p220_p5 = scmp.lt.s32.totalorder %s809_s19, 3 }
  0x1a   : > { %s610_s9 = sshra.s32 %s186_s5, 4  ;;  %p614_p8 = pneg %p914_p2  ;;  %s611_s9 = int_to_ptr.hbm [resolvable:$true] %s610_s9 }
  0x1b   : > { %s612_s10 = scalar_lea.hbm %s611_s9, 16  ;;  %s617_s20 = scalar_lea.hbm %s1029_s0, 16 }
  0x1c   : > { %p613_p7 = scmp.ne.s32.totalorder %s611_s9, %s612_s10  ;;  %p619_p4 = scmp.lt.s32.totalorder %s617_s20, %s612_s10 }
  0x1e   : > { %p615_p9 = pnand %p614_p8, %p613_p7 }
  0x20   : > { %p616_p10 = pneg %p615_p9 }
  0x22   : > { %p621_p11 = pnand %p619_p4, %p616_p10 }
  0x24   : > { %624 = shalt.err (!%p621_p11)
}
  0x25   : > { %s812_s21 = smov 128   ;;  %s813_s23 = smov 8  }
  0x26   : > { %522 = dma.hbm_to_vmem [thread:$0]  (!%p914_p2), %s186_s5, 256, %s188_s7, [#allocation3], %s812_s21, %s812_s21, %s813_s23  }
  0x27   : > { %p934_p1 = pnand %p497_p3, %p220_p5  ;;  %s210_s4 = sshll.u32 %s1030_s1, 4  ;;  %s211_s4 = int_to_ptr.hbm [resolvable:$true] %s210_s4 }
  0x28   : > { %s814_s6 = smov [#allocation5]   ;;  %s640_s10 = sshra.s32 %s211_s4, 4  ;;  %s641_s10 = int_to_ptr.hbm [resolvable:$true] %s640_s10 }
  0x29   : > { %s212_s9 = sshll.u32 %s814_s6, 4  ;;  %s642_s11 = scalar_lea.hbm %s641_s10, 16  ;;  %s213_s9 = int_to_ptr.vmem [resolvable:$true] %s212_s9 }
  0x2a   : > { %p643_p7 = scmp.ne.s32.totalorder %s641_s10, %s642_s11  ;;  %s647_s15 = scalar_lea.hbm %s1030_s1, 16 }
  0x2b   : > { %p649_p3 = scmp.lt.s32.totalorder %s647_s15, %s642_s11 }
  0x2c   : > { %p645_p9 = pnand %p643_p7, %p614_p8 }
  0x2e   : > { %p646_p10 = pneg %p645_p9 }
  0x30   : > { %p651_p5 = pnand %p649_p3, %p646_p10 }
  0x32   : > { %654 = shalt.err (!%p651_p5)
}
  0x33   : > { %525 = dma.hbm_to_vmem [thread:$0]  (!%p914_p2), %s211_s4, 256, %s213_s9, [#allocation6], %s812_s21, %s812_s21, %s813_s23  }
  0x34   : > { %224 = sbr.rel (%p934_p1) target bundleno = 90 (0x5a), region = 28  ;;  %s226_s20 = sand.u32 (!%p934_p1), 1, %s797_s16  }
  0x35   : > { %s498_s26 = sshll.u32 (!%p934_p1), %s226_s20, 4  ;;  %s227_s30 = scalar_lea.sflag (!%p934_p1), [#allocation3], %s226_s20 }
  0x36   : > { %s230_s6 = scalar_lea.vmem (!%p934_p1), [#allocation2], %s498_s26 }
  0x39   : > { %763 = dma.done.wait (%p885_p6), %s227_s30, 256  }
  0x3a   : > { %765 = vsyncadd (%p885_p6), %s227_s30, 4294967040  ;;  %s237_s10 = scalar_lea.sflag [#allocation6], %s226_s20  ;;  %s240_s11 = scalar_lea.vmem [#allocation5], %s498_s26 }
  0x3b   : > { %767 = dma.done.wait (%p885_p6), %s237_s10, 256  }
  0x3c   : > { %769 = vsyncadd (%p885_p6), %s237_s10, 4294967040  ;;  %s502_s8 = sshll.u32 %s801_s17, 4  ;;  %v296_v0 = vlaneseq  ;;  %s962_s21 = sand.u32 1, %s785_s13   ;;  %v288_v6 = vld [vmem:[%s230_s6] sm:$0xff]  ;;  %v289_v7 = vld [vmem:[%s230_s6 + $0x8] sm:$0xff] }
  0x3d   : > { %v299_v1 = vstv %s502_s8  ;;  %s500_s23 = sshll.u32 %s962_s21, 3  ;;  %v290_v8 = vld [vmem:[%s240_s11] sm:$0xff]  ;;  %s505_s24 = sshll.u32 %s801_s17, 3  ;;  %v291_v9 = vld [vmem:[%s240_s11 + $0x8] sm:$0xff] }
  0x3e   : > { %v297_v2 = vshrl.u32 %v296_v0, 7  ;;  %v292_v10 = vsub.f32 %v288_v6, %v290_v8  ;;  %v293_v11 = vsub.f32 %v289_v7, %v291_v9  ;;  %s334_s9 = scalar_lea.hbm %s1031_s2, %s505_s24  ;;  %s348_s15 = scalar_lea.hbm %s1032_s3, %s505_s24 }
  0x3f   : > { %s266_s17 = scalar_lea.vmem [#allocation7], %s500_s23  ;;  %s338_s26 = sshll.u32 %s334_s9, 4  ;;  %s339_s26 = int_to_ptr.hbm [resolvable:$true] %s338_s26 }
  0x40   : > { %v298_v3 = vadd.s32 8, %v297_v2  ;;  %v300_v4 = vadd.s32 %v299_v1, %v297_v2  ;;  %s336_s20 = sshll.u32 %s266_s17, 4  ;;  %s273_s30 = scalar_lea.vmem [#allocation8], %s500_s23  ;;  %s337_s20 = int_to_ptr.vmem [resolvable:$true] %s336_s20 }
  0x41   : > { %s350_s6 = sshll.u32 %s273_s30, 4  ;;  %s352_s10 = sshll.u32 %s348_s15, 4  ;;  %s972_s6 = int_to_ptr.vmem [resolvable:$true] %s350_s6  ;;  %s974_s10 = int_to_ptr.hbm [resolvable:$true] %s352_s10 }
  0x42   : > { %v301_v5 = vadd.s32 %v299_v1, %v298_v3  ;;  %vm302_vm0 = vcmp.lt.s32.totalorder %v300_v4, 16  ;;  %s319_s11 = scalar_lea.sflag [#allocation4], %s962_s21  ;;  %s684_s8 = sshra.s32 %s339_s26, 4  ;;  %s685_s8 = int_to_ptr.hbm [resolvable:$true] %s684_s8 }
  0x43   : > { %v304_v12 = vsel %vm302_vm0, %v292_v10, 0.0  ;;  %s686_s24 = scalar_lea.hbm %s685_s8, 8  ;;  %s690_s4 = scalar_lea.hbm %s1031_s2, 16 }
  0x44   : > { %vm303_vm1 = vcmp.lt.s32.totalorder %v301_v5, 16  ;;  %v306_v14 = vmul.f32 %v304_v12, %v304_v12  ;;  %v308_v15 = vand.u32 2147483647, %v304_v12  ;;  %p687_p6 = scmp.ne.s32.totalorder %s685_s8, %s686_s24  ;;  %p691_p4 = scmp.lt.s32.totalorder %s685_s8, %s1031_s2 }
  0x45   : > { %v305_v13 = vsel %vm303_vm1, %v293_v11, 0.0  ;;  %p692_p11 = scmp.lt.s32.totalorder %s690_s4, %s686_s24 }
  0x46   : > { %v307_v16 = vmul.f32 %v305_v13, %v305_v13  ;;  %v309_v17 = vand.u32 2147483647, %v305_v13  ;;  %p688_p2 = pnand %p687_p6, %p899_p12 }
  0x47   : > { %p693_p1 = por %p692_p11, %p691_p4 }
  0x48   : > { %v311_v18 = vadd.f32 %v307_v16, %v306_v14  ;;  %v315_v19 = vadd.f32 %v309_v17, %v308_v15  ;;  %p689_p8 = pneg %p688_p2 }
  0x4a   : > { %313 = vst [vmem:[%s266_s17] sm:$0xff] %v311_v18  ;;  %p694_p7 = pnand %p693_p1, %p689_p8 }
  0x4b   : > { %317 = vst [vmem:[%s273_s30] sm:$0xff] %v315_v19 }
  0x4c   : > { %697 = shalt.err (!%p694_p7)
}
  0x4d   : > { %515 = dma.vmem_to_hbm [thread:$0]  (%p899_p12), %s337_s20, 128, %s339_s26, %s319_s11  }
  0x4e   : > { %s324_s7 = scalar_lea.sflag [#allocation9], %s962_s21  ;;  %s712_s15 = sshra.s32 %s974_s10, 4  ;;  %s713_s15 = int_to_ptr.hbm [resolvable:$true] %s712_s15 }
  0x4f   : > { %s714_s17 = scalar_lea.hbm %s713_s15, 8  ;;  %s718_s24 = scalar_lea.hbm %s1032_s3, 16 }
  0x50   : > { %p715_p9 = scmp.ne.s32.totalorder %s713_s15, %s714_s17  ;;  %p719_p5 = scmp.lt.s32.totalorder %s713_s15, %s1032_s3 }
  0x51   : > { %p720_p6 = scmp.lt.s32.totalorder %s718_s24, %s714_s17 }
  0x52   : > { %p716_p10 = pnand %p715_p9, %p899_p12 }
  0x53   : > { %p721_p2 = por %p720_p6, %p719_p5 }
  0x54   : > { %p717_p3 = pneg %p716_p10 }
  0x56   : > { %p722_p8 = pnand %p721_p2, %p717_p3 }
  0x58   : > { %725 = shalt.err (!%p722_p8)
}
  0x59   : > { %516 = dma.vmem_to_hbm [thread:$0]  (%p899_p12), %s972_s6, 128, %s974_s10, %s324_s7  }
  0x5a PF: > { %s364_s21 = sand.u32 1, %s781_s12   ;;  %p527_p4 = pnand %p490_p13, %p904_p0 }
  0x5b   : > { %s365_s20 = scalar_lea.sflag [#allocation4], %s364_s21 }
  0x5c   : > { %p528_p11 = pneg %p527_p4 }
  0x5e   : > { %771 = dma.done.wait (%p528_p11), %s365_s20, 128  }
  0x5f   : > { %773 = vsyncadd (%p528_p11), %s365_s20, 4294967168  ;;  %s375_s26 = scalar_lea.sflag [#allocation9], %s364_s21 }
  0x60   : > { %775 = dma.done.wait (%p528_p11), %s375_s26, 128  }
  0x61   : > { %777 = vsyncadd (%p528_p11), %s375_s26, 4294967168  ;;  %s26_s19 = sadd.s32 1, %s809_s19   ;;  %s1039_s12 = smov %s785_s13 }
  0x62   : > { %p23_p1 = scmp.ge.s32.totalorder %s26_s19, 4   ;;  %s1040_s13 = smov %s789_s14 }
  0x63   : > { %s1041_s14 = smov %s893_s27  ;;  %s1042_s15 = smov %s797_s16 }
  0x64   : > { %s1019_s16 = smov 0   ;;  %s1043_s17 = smov %s805_s18 }
  0x65   : > { %s1044_s18 = smov %s1046_s22  ;;  %25 = sbr.rel (!%p23_p1) target bundleno = 11 (0xb), region = 107 }
  0x6a   :  { %381 = vsyncpa [#allocation3], 1 }
  0x6b   :  { %383 = vsyncpa [#allocation3 + $0x1], 1 }
  0x6c   :  { %384 = vsyncpa [#allocation6], 1 }
  0x6d   :  { %386 = vsyncpa [#allocation6 + $0x1], 1 }
  0x6e   :  { %387 = vsyncpa [#allocation4], 1 }
  0x6f   :  { %389 = vsyncpa [#allocation4 + $0x1], 1 }
  0x70   :  { %390 = vsyncpa [#allocation9], 1 }
  0x71   :  { %392 = vsyncpa [#allocation9 + $0x1], 1 }

</bundles_post_ra>
